<compile_context>
chip_gen: v6e
topology: v6e:2x2x1
jax: 0.10.0
libtpu: 0.0.40
codegen_flags: <defaults>
</compile_context>

<pallas_src>
from functools import partial

import jax
import jax.numpy as jnp
from jax.experimental import pallas as pl
from jax.experimental.pallas import tpu as pltpu

# gnn tables up to this many bytes are staged whole into VMEM by BlockSpec;
# larger tables fall back to manual per-graph DMA gather from HBM.
_GNN_VMEM_LIMIT_BYTES = 4 * 1024 * 1024


def _round_up(x, m):
    return ((x + m - 1) // m) * m


def _make_kernel(batch, h_text, g_hidden, gnn_in_vmem):
    """Build the fused classifier kernel; batch/h_text/g_hidden are static."""
    in_size = h_text + 2 * g_hidden
    g = g_hidden

    def _mlp(cls_ref, w1_ref, b1_ref, w2_ref, b2_ref, o_ref, x_buf):
        # x_buf lanes [h_text:in_size) already hold the gathered graph features.
        x_buf[:, 0:h_text] = cls_ref[...]
        h = jnp.dot(x_buf[...], w1_ref[...], preferred_element_type=jnp.float32)
        h = jnp.tanh(h + b1_ref[...])
        # TODO(synk): dropout omitted (module evaluated in inference mode).
        y = jnp.dot(h, w2_ref[...], preferred_element_type=jnp.float32)
        o_ref[...] = y + b2_ref[...]

    if gnn_in_vmem:

        def kernel(ptr_ref,            # SMEM  (B+1,) int32  (scalar prefetch)
                   cls_ref,            # VMEM  (B_pad, H)    f32
                   gnn_ref,            # VMEM  (N_nodes, G)  f32  (whole table)
                   w1_ref,             # VMEM  (H+2G, HID)   f32
                   b1_ref,             # VMEM  (1, HID)      f32
                   w2_ref,             # VMEM  (HID, LP)     f32  (lane-padded)
                   b2_ref,             # VMEM  (1, LP)       f32
                   o_ref,              # VMEM  (B_pad, LP)   f32
                   x_buf):             # VMEM  (B_pad, in_size) f32 scratch
            for b in range(batch):
                # Last two node embeddings of graph b.  Clamp guards graphs
                # with < 2 nodes (the PyTorch reference assumes >= 2).
                end = jnp.maximum(ptr_ref[b + 1], 2)
                prev = gnn_ref[pl.ds(end - 2, 1), :]          # (1, G)
                last = gnn_ref[pl.ds(end - 1, 1), :]          # (1, G)
                x_buf[b:b + 1, h_text:h_text + g] = prev
                x_buf[b:b + 1, h_text + g:in_size] = last
            _mlp(cls_ref, w1_ref, b1_ref, w2_ref, b2_ref, o_ref, x_buf)

        return kernel

    def kernel(ptr_ref,                # SMEM  (B+1,) int32  (scalar prefetch)
               cls_ref,                # VMEM  (B_pad, H)    f32
               gnn_hbm,                # HBM   (N_nodes, G)  f32  (pl.ANY)
               w1_ref, b1_ref, w2_ref, b2_ref,
               o_ref,
               x_buf,                  # VMEM  (B_pad, in_size) f32 scratch
               pair_buf,               # VMEM  (B, 2, G)     f32 scratch
               sem):                   # DMA semaphores (B,)
        # One merged DMA per graph: rows end-2 and end-1 are contiguous in HBM.
        copies = []
        for b in range(batch):
            end = jnp.maximum(ptr_ref[b + 1], 2)
            cp = pltpu.make_async_copy(
                gnn_hbm.at[pl.ds(end - 2, 2), :], pair_buf.at[b], sem.at[b])
            cp.start()
            copies.append(cp)
        for b, cp in enumerate(copies):
            cp.wait()
            x_buf[b:b + 1, h_text:h_text + g] = pair_buf[b, 0:1, :]
            x_buf[b:b + 1, h_text + g:in_size] = pair_buf[b, 1:2, :]
        _mlp(cls_ref, w1_ref, b1_ref, w2_ref, b2_ref, o_ref, x_buf)

    return kernel


@partial(jax.jit, static_argnames=("num_labels",))
def _forward(lm_x, gnn_x, ptr, w1, b1, w2_p, b2_p, *, num_labels):
    batch, _, h_text = lm_x.shape
    g_hidden = gnn_x.shape[1]
    in_size, hid = w1.shape
    lp = w2_p.shape[1]
    assert in_size == h_text + 2 * g_hidden

    b_pad = _round_up(max(batch, 8), 8)           # sublane-aligned batch
    cls = jnp.pad(lm_x[:, 0, :], ((0, b_pad - batch), (0, 0)))
    ptr = ptr.astype(jnp.int32)

    gnn_in_vmem = gnn_x.size * gnn_x.dtype.itemsize <= _GNN_VMEM_LIMIT_BYTES
    kernel = _make_kernel(batch, h_text, g_hidden, gnn_in_vmem)

    if gnn_in_vmem:
        gnn_spec = pl.BlockSpec(gnn_x.shape, lambda i, p: (0, 0))
    else:
        gnn_spec = pl.BlockSpec(memory_space=pl.ANY)

    scratch = [pltpu.VMEM((b_pad, in_size), jnp.float32)]   # fused lhs buffer
    if not gnn_in_vmem:
        scratch += [pltpu.VMEM((batch, 2, g_hidden), jnp.float32),
                    pltpu.SemaphoreType.DMA((batch,))]

    cost = pl.CostEstimate(
        flops=2 * b_pad * (in_size * hid + hid * lp),
        transcendentals=b_pad * hid,
        bytes_accessed=4 * (b_pad * h_text + gnn_x.size + in_size * hid
                            + hid + hid * lp + lp + b_pad * lp),
    )

    out = pl.pallas_call(
        kernel,
        out_shape=jax.ShapeDtypeStruct((b_pad, lp), jnp.float32),
        grid_spec=pltpu.PrefetchScalarGridSpec(
            num_scalar_prefetch=1,
            grid=(1,),
            in_specs=[
                pl.BlockSpec((b_pad, h_text), lambda i, p: (0, 0)),   # cls
                gnn_spec,                                             # gnn_x
                pl.BlockSpec((in_size, hid), lambda i, p: (0, 0)),    # w1
                pl.BlockSpec((1, hid), lambda i, p: (0, 0)),          # b1
                pl.BlockSpec((hid, lp), lambda i, p: (0, 0)),         # w2 (padded)
                pl.BlockSpec((1, lp), lambda i, p: (0, 0)),           # b2 (padded)
            ],
            out_specs=pl.BlockSpec((b_pad, lp), lambda i, p: (0, 0)),
            scratch_shapes=scratch,
        ),
        compiler_params=pltpu.CompilerParams(
            dimension_semantics=("arbitrary",)),
        cost_estimate=cost,
    )(ptr, cls, gnn_x, w1, b1, w2_p, b2_p)

    return out[:batch, :num_labels]


def prepare_params(params):
    """One-time parameter preparation: lane-pad the output layer to 128 lanes
    so the kernel's final store is a full unmasked vst.  Called once, not per
    forward."""
    w1, b1, w2, b2 = params["w1"], params["b1"], params["w2"], params["b2"]
    num_labels = w2.shape[1]
    lp = _round_up(max(num_labels, 128), 128)
    return {
        "w1": w1,
        "b1": b1,
        "w2_p": jnp.pad(w2, ((0, 0), (0, lp - num_labels))),
        "b2_p": jnp.pad(b2, ((0, 0), (0, lp - num_labels))),
        "num_labels": int(num_labels),
    }


def grease_arg_classification_transform(lm_x, gnn_x, ptr, prepared):
    """lm_x: (B, S, H) f32, gnn_x: (N_nodes, G) f32, ptr: (B+1,) int32."""
    return _forward(lm_x, gnn_x, ptr,
                    prepared["w1"], prepared["b1"],
                    prepared["w2_p"], prepared["b2_p"],
                    num_labels=prepared["num_labels"])


def init_params(key, input_size, hidden_size, num_labels):
    """Deterministic synthetic parameters (kept in (in, out) layout so the
    kernel computes x @ W + b, i.e. the transpose of PyTorch's Linear.weight)."""
    k1, k2, k3, k4 = jax.random.split(key, 4)
    w1 = jax.random.normal(k1, (input_size, hidden_size), jnp.float32) * 0.02
    b1 = jax.random.normal(k2, (1, hidden_size), jnp.float32) * 0.02
    w2 = jax.random.normal(k3, (hidden_size, num_labels), jnp.float32) * 0.02
    b2 = jax.random.normal(k4, (1, num_labels), jnp.float32) * 0.02
    return {"w1": w1, "b1": b1, "w2": w2, "b2": b2}


if __name__ == "__main__":
    # config: hidden_size=32, gnn_hidden_size=16, num_labels=4,
    #         input_text=True, input_graph=True
    B, S, HIDDEN, GNN_HIDDEN, NUM_LABELS = 2, 8, 32, 16, 4
    INPUT_SIZE = HIDDEN + (GNN_HIDDEN << 1)   # 32 + 32 = 64

    key = jax.random.PRNGKey(0)
    k_lm, k_gnn, k_par = jax.random.split(key, 3)

    lm_x = jax.random.normal(k_lm, (B, S, HIDDEN), jnp.float32)
    # two graphs with 5 and 6 nodes -> ptr = [0, 5, 11]
    n_nodes = 11
    gnn_x = jax.random.normal(k_gnn, (n_nodes, GNN_HIDDEN), jnp.float32)
    ptr = jnp.array([0, 5, 11], dtype=jnp.int32)

    params = init_params(k_par, INPUT_SIZE, HIDDEN, NUM_LABELS)
    prepared = prepare_params(params)          # one-time weight padding

    out = grease_arg_classification_transform(lm_x, gnn_x, ptr, prepared)
    out = jax.block_until_ready(out)

    # plain-JAX reference
    cls = lm_x[:, 0, :]
    gfeat = jnp.concatenate([gnn_x[ptr[1:] - 2], gnn_x[ptr[1:] - 1]], axis=1)
    x_ref = jnp.concatenate([cls, gfeat], axis=1)
    h_ref = jnp.tanh(jnp.dot(x_ref, params["w1"],
                             precision=jax.lax.Precision.HIGHEST) + params["b1"])
    ref = jnp.dot(h_ref, params["w2"],
                  precision=jax.lax.Precision.HIGHEST) + params["b2"]

    assert out.shape == (B, NUM_LABELS)
    assert jnp.allclose(out, ref, atol=1e-4, rtol=1e-4), "mismatch vs reference"

    print("KERNEL_OK")
</pallas_src>

<mosaic_0001>
module attributes {stable_mosaic.version = 11 : i64} {
  func.func @kernel(%arg0: i32, %arg1: memref<3xi32, #tpu.memory_space<smem>>, %arg2: memref<8x32xf32, #tpu.memory_space<vmem>>, %arg3: memref<11x16xf32, #tpu.memory_space<vmem>>, %arg4: memref<64x32xf32, #tpu.memory_space<vmem>>, %arg5: memref<1x32xf32, #tpu.memory_space<vmem>>, %arg6: memref<32x128xf32, #tpu.memory_space<vmem>>, %arg7: memref<1x128xf32, #tpu.memory_space<vmem>>, %arg8: memref<8x128xf32, #tpu.memory_space<vmem>>, %arg9: memref<8x64xf32, #tpu.memory_space<vmem>>) attributes {dimension_semantics = [#tpu.dimension_semantics<arbitrary>], iteration_bounds = array<i64: 1>, scalar_prefetch = 1 : i64, scratch_operands = 1 : i64, tpu.core_type = #tpu.core_type<tc>, window_params = [{pipeline_mode = #tpu.pipeline_mode<synchronous>, transform_indices = @transform_0, window_bounds = array<i64: 8, 32>}, {pipeline_mode = #tpu.pipeline_mode<synchronous>, transform_indices = @transform_1, window_bounds = array<i64: 11, 16>}, {pipeline_mode = #tpu.pipeline_mode<synchronous>, transform_indices = @transform_2, window_bounds = array<i64: 64, 32>}, {pipeline_mode = #tpu.pipeline_mode<synchronous>, transform_indices = @transform_3, window_bounds = array<i64: 1, 32>}, {pipeline_mode = #tpu.pipeline_mode<synchronous>, transform_indices = @transform_4, window_bounds = array<i64: 32, 128>}, {pipeline_mode = #tpu.pipeline_mode<synchronous>, transform_indices = @transform_5, window_bounds = array<i64: 1, 128>}, {pipeline_mode = #tpu.pipeline_mode<synchronous>, transform_indices = @transform_6, window_bounds = array<i64: 8, 128>}]} {
    %c1 = arith.constant 1 : index
    %0 = memref.load %arg1[%c1] : memref<3xi32, #tpu.memory_space<smem>>
    %c2_i32 = arith.constant 2 : i32
    %1 = arith.maxsi %0, %c2_i32 : i32
    %c2_i32_0 = arith.constant 2 : i32
    %2 = arith.subi %1, %c2_i32_0 : i32
    %3 = arith.index_cast %2 : i32 to index
    %c0 = arith.constant 0 : index
    %4 = vector.load %arg3[%3, %c0] : memref<11x16xf32, #tpu.memory_space<vmem>>, vector<1x16xf32>
    %c1_i32 = arith.constant 1 : i32
    %5 = arith.subi %1, %c1_i32 : i32
    %6 = arith.index_cast %5 : i32 to index
    %c0_1 = arith.constant 0 : index
    %7 = vector.load %arg3[%6, %c0_1] : memref<11x16xf32, #tpu.memory_space<vmem>>, vector<1x16xf32>
    %c0_2 = arith.constant 0 : index
    %c32 = arith.constant 32 : index
    %8 = vector.load %arg9[%c0_2, %c32] : memref<8x64xf32, #tpu.memory_space<vmem>>, vector<1x16xf32>
    tpu.vector_store %arg9[%c0_2, %c32], %4 {strides = array<i32>} : memref<8x64xf32, #tpu.memory_space<vmem>>, vector<1x16xf32>,
    %c0_3 = arith.constant 0 : index
    %c48 = arith.constant 48 : index
    %9 = vector.load %arg9[%c0_3, %c48] : memref<8x64xf32, #tpu.memory_space<vmem>>, vector<1x16xf32>
    tpu.vector_store %arg9[%c0_3, %c48], %7 {strides = array<i32>} : memref<8x64xf32, #tpu.memory_space<vmem>>, vector<1x16xf32>,
    %c2 = arith.constant 2 : index
    %10 = memref.load %arg1[%c2] : memref<3xi32, #tpu.memory_space<smem>>
    %c2_i32_4 = arith.constant 2 : i32
    %11 = arith.maxsi %10, %c2_i32_4 : i32
    %c2_i32_5 = arith.constant 2 : i32
    %12 = arith.subi %11, %c2_i32_5 : i32
    %13 = arith.index_cast %12 : i32 to index
    %c0_6 = arith.constant 0 : index
    %14 = vector.load %arg3[%13, %c0_6] : memref<11x16xf32, #tpu.memory_space<vmem>>, vector<1x16xf32>
    %c1_i32_7 = arith.constant 1 : i32
    %15 = arith.subi %11, %c1_i32_7 : i32
    %16 = arith.index_cast %15 : i32 to index
    %c0_8 = arith.constant 0 : index
    %17 = vector.load %arg3[%16, %c0_8] : memref<11x16xf32, #tpu.memory_space<vmem>>, vector<1x16xf32>
    %c1_9 = arith.constant 1 : index
    %c32_10 = arith.constant 32 : index
    %18 = vector.load %arg9[%c1_9, %c32_10] : memref<8x64xf32, #tpu.memory_space<vmem>>, vector<1x16xf32>
    tpu.vector_store %arg9[%c1_9, %c32_10], %14 {strides = array<i32>} : memref<8x64xf32, #tpu.memory_space<vmem>>, vector<1x16xf32>,
    %c1_11 = arith.constant 1 : index
    %c48_12 = arith.constant 48 : index
    %19 = vector.load %arg9[%c1_11, %c48_12] : memref<8x64xf32, #tpu.memory_space<vmem>>, vector<1x16xf32>
    tpu.vector_store %arg9[%c1_11, %c48_12], %17 {strides = array<i32>} : memref<8x64xf32, #tpu.memory_space<vmem>>, vector<1x16xf32>,
    %c0_13 = arith.constant 0 : index
    %c0_14 = arith.constant 0 : index
    %20 = vector.load %arg2[%c0_13, %c0_14] : memref<8x32xf32, #tpu.memory_space<vmem>>, vector<8x32xf32>
    %c0_15 = arith.constant 0 : index
    %c0_16 = arith.constant 0 : index
    %21 = vector.load %arg9[%c0_15, %c0_16] : memref<8x64xf32, #tpu.memory_space<vmem>>, vector<8x32xf32>
    tpu.vector_store %arg9[%c0_15, %c0_16], %20 {strides = array<i32>} : memref<8x64xf32, #tpu.memory_space<vmem>>, vector<8x32xf32>,
    %c0_17 = arith.constant 0 : index
    %c0_18 = arith.constant 0 : index
    %22 = vector.load %arg9[%c0_17, %c0_18] : memref<8x64xf32, #tpu.memory_space<vmem>>, vector<8x64xf32>
    %c0_19 = arith.constant 0 : index
    %c0_20 = arith.constant 0 : index
    %23 = vector.load %arg4[%c0_19, %c0_20] : memref<64x32xf32, #tpu.memory_space<vmem>>, vector<64x32xf32>
    %cst = arith.constant dense<0.000000e+00> : vector<8x32xf32>
    %24 = tpu.matmul %22, %23, %cst {dimension_numbers = #tpu.dot_dimension_numbers<[1], [0], [0], [1], [0, 0, 1, 1], [], []>} : vector<8x64xf32>, vector<64x32xf32>, vector<8x32xf32> -> vector<8x32xf32>
    %c0_21 = arith.constant 0 : index
    %c0_22 = arith.constant 0 : index
    %25 = vector.load %arg5[%c0_21, %c0_22] : memref<1x32xf32, #tpu.memory_space<vmem>>, vector<1x32xf32>
    %26 = vector.broadcast %25 : vector<1x32xf32> to vector<8x32xf32>
    %27 = arith.addf %24, %26 : vector<8x32xf32>
    %28 = math.tanh %27 : vector<8x32xf32>
    %c0_23 = arith.constant 0 : index
    %c0_24 = arith.constant 0 : index
    %29 = vector.load %arg6[%c0_23, %c0_24] : memref<32x128xf32, #tpu.memory_space<vmem>>, vector<32x128xf32>
    %cst_25 = arith.constant dense<0.000000e+00> : vector<8x128xf32>
    %30 = tpu.matmul %28, %29, %cst_25 {dimension_numbers = #tpu.dot_dimension_numbers<[1], [0], [0], [1], [0, 0, 1, 1], [], []>} : vector<8x32xf32>, vector<32x128xf32>, vector<8x128xf32> -> vector<8x128xf32>
    %c0_26 = arith.constant 0 : index
    %c0_27 = arith.constant 0 : index
    %31 = vector.load %arg7[%c0_26, %c0_27] : memref<1x128xf32, #tpu.memory_space<vmem>>, vector<1x128xf32>
    %32 = vector.broadcast %31 : vector<1x128xf32> to vector<8x128xf32>
    %33 = arith.addf %30, %32 : vector<8x128xf32>
    %c0_28 = arith.constant 0 : index
    %c0_29 = arith.constant 0 : index
    %34 = vector.load %arg8[%c0_28, %c0_29] : memref<8x128xf32, #tpu.memory_space<vmem>>, vector<8x128xf32>
    tpu.vector_store %arg8[%c0_28, %c0_29], %33 {strides = array<i32>} : memref<8x128xf32, #tpu.memory_space<vmem>>, vector<8x128xf32>,
    return
  }
  func.func @transform_0(%arg0: i32, %arg1: memref<3xi32, #tpu.memory_space<smem>>) -> (i32, i32) {
    %c0_i32 = arith.constant 0 : i32
    %c0_i32_0 = arith.constant 0 : i32
    %c0_i32_1 = arith.constant 0 : i32
    return %c0_i32, %c0_i32_0 : i32, i32
  }
  func.func @transform_1(%arg0: i32, %arg1: memref<3xi32, #tpu.memory_space<smem>>) -> (i32, i32) {
    %c0_i32 = arith.constant 0 : i32
    %c0_i32_0 = arith.constant 0 : i32
    %c0_i32_1 = arith.constant 0 : i32
    return %c0_i32, %c0_i32_0 : i32, i32
  }
  func.func @transform_2(%arg0: i32, %arg1: memref<3xi32, #tpu.memory_space<smem>>) -> (i32, i32) {
    %c0_i32 = arith.constant 0 : i32
    %c0_i32_0 = arith.constant 0 : i32
    %c0_i32_1 = arith.constant 0 : i32
    return %c0_i32, %c0_i32_0 : i32, i32
  }
  func.func @transform_3(%arg0: i32, %arg1: memref<3xi32, #tpu.memory_space<smem>>) -> (i32, i32) {
    %c0_i32 = arith.constant 0 : i32
    %c0_i32_0 = arith.constant 0 : i32
    %c0_i32_1 = arith.constant 0 : i32
    return %c0_i32, %c0_i32_0 : i32, i32
  }
  func.func @transform_4(%arg0: i32, %arg1: memref<3xi32, #tpu.memory_space<smem>>) -> (i32, i32) {
    %c0_i32 = arith.constant 0 : i32
    %c0_i32_0 = arith.constant 0 : i32
    %c0_i32_1 = arith.constant 0 : i32
    return %c0_i32, %c0_i32_0 : i32, i32
  }
  func.func @transform_5(%arg0: i32, %arg1: memref<3xi32, #tpu.memory_space<smem>>) -> (i32, i32) {
    %c0_i32 = arith.constant 0 : i32
    %c0_i32_0 = arith.constant 0 : i32
    %c0_i32_1 = arith.constant 0 : i32
    return %c0_i32, %c0_i32_0 : i32, i32
  }
  func.func @transform_6(%arg0: i32, %arg1: memref<3xi32, #tpu.memory_space<smem>>) -> (i32, i32) {
    %c0_i32 = arith.constant 0 : i32
    %c0_i32_0 = arith.constant 0 : i32
    %c0_i32_1 = arith.constant 0 : i32
    return %c0_i32, %c0_i32_0 : i32, i32
  }
}

</mosaic_0001>

<bundles_post_ra>
// kernel: _forward.1
= control target key start
LH: loop header
LB: loop body
LE: loop exit
PB: predicated region body
PF: predicated region fallthrough
CT: control target
= control target key end

     0   :  { %s456_s0 = inlined_call_operand.vmem [shape: s32[3], index: 0, kind: input, shape index: {}]   ;;  %s457_s1 = inlined_call_operand.vmem [shape: f32[8,32], index: 1, kind: input, shape index: {}]   ;;  %s458_s2 = inlined_call_operand.vmem [shape: f32[11,16], index: 2, kind: input, shape index: {}]   ;;  %s459_s3 = inlined_call_operand.vmem [shape: f32[64,32], index: 3, kind: input, shape index: {}]   ;;  %s460_s4 = inlined_call_operand.vmem [shape: f32[1,32], index: 4, kind: input, shape index: {}]   ;;  %s461_s5 = inlined_call_operand.vmem [shape: f32[32,128], index: 5, kind: input, shape index: {}]   ;;  %s462_s6 = inlined_call_operand.vmem [shape: f32[1,128], index: 6, kind: input, shape index: {}]   ;;  %s463_s7 = inlined_call_operand.vmem [shape: f32[8,128], index: 7, kind: output, shape index: {}]  }
   0x1   :  { %s12_s26 = sshll.u32 %s456_s0, 4  ;;  %s13_s26 = int_to_ptr.vmem [resolvable:$true] %s12_s26 }
   0x2   :  { %s318_s27 = scalar_lea.vmem %s13_s26, 16  ;;  %p323_p1 = scmp.lt.s32.totalorder %s13_s26, %s13_s26 }
   0x3   :  { %p319_p0 = scmp.ne.s32.totalorder %s13_s26, %s318_s27  ;;  %p324_p2 = scmp.lt.s32.totalorder %s318_s27, %s318_s27 }
   0x5   :  { %p325_p3 = por %p324_p2, %p323_p1 }
   0x7   :  { %p326_p4 = pnand %p325_p3, %p319_p0 }
   0x9   :  { %329 = shalt.err (!%p326_p4)  }
   0xa   :  { %s332_s28 = smov [#allocation4]  }
   0xb   :  { %15 = dma.vmem_to_smem %s13_s26, 16, %s332_s28, [#allocation3] }
   0xc   :  { %330 = dma.done.wait [#allocation3], 16 }
   0xd   :  { %331 = vsyncadd [#allocation3], 4294967280 }
   0xe   :  { %17 = sfence }
   0xf   :  { %s257_s29 = sld [smem:[#allocation4 + $0x1]]  ;;  %v81_v0 = vld [vmem:[%s459_s3 + $0x38] sm:$0xff]  ;;  %v333_v1 = vmov 0.0   ;;  %v80_v2 = vld [vmem:[%s459_s3 + $0x30] sm:$0xff]  ;;  %v79_v3 = vld [vmem:[%s459_s3 + $0x28] sm:$0xff]  ;;  %vm334_vm0 = vmmov 0  }
  0x10   :  { %s260_s9 = sld [smem:[#allocation4 + $0x2]]  ;;  %281 = vmatprep.subr.mxu0 %v333_v1  ;;  %300 = vmatprep.subr.mxu1 %v333_v1  ;;  %v78_v4 = vld [vmem:[%s459_s3 + $0x20] sm:$0xff]  ;;  %v77_v5 = vld [vmem:[%s459_s3 + $0x18] sm:$0xff]  ;;  %v76_v6 = vld [vmem:[%s459_s3 + $0x10] sm:$0xff]  ;;  %s336_s0 = smov 48   ;;  %vm43_vm1 = vcmask 385280  }
  0x11   :  { %282 = vmatpush3.msra.mxu0 %v81_v0  ;;  %297 = vmatprep.mubr.msk.f32.mxu0 %vm334_vm0, %v333_v1  ;;  %v75_v7 = vld [vmem:[%s459_s3 + $0x8] sm:$0xff]  ;;  %v74_v12 = vld [vmem:[%s459_s3] sm:$0xff]  ;;  %vm49_vm2 = vcmask 516480   ;;  %vm71_vm3 = vcmask 261120   ;;  %vm89_vm4 = vcmask 523264   ;;  %v167_v19 = vld [vmem:[%s461_s5 + $0x18] sm:$0xff] }
  0x12   :  { %283 = vmatprep.subr.mxu0 %v333_v1  ;;  %308 = vmatprep.mubr.msk.f32.mxu1 %vm334_vm0, %v333_v1  ;;  %v70_v16 = vld [vmem:[%s457_s1] sm:$0xff]  ;;  %v166_v20 = vld [vmem:[%s461_s5 + $0x10] sm:$0xff]  ;;  %v165_v21 = vld [vmem:[%s461_s5 + $0x8] sm:$0xff] }
  0x13   :  { %284 = vmatpush3.msra.mxu0 %v80_v2  ;;  %301 = vmatpush3.msra.mxu1 %v167_v19  ;;  %v164_v22 = vld [vmem:[%s461_s5] sm:$0xff] }
  0x14   :  { %285 = vmatprep.subr.mxu0 %v333_v1  ;;  %302 = vmatprep.subr.mxu1 %v333_v1  ;;  %v263_v23 = vld [vmem:[%s460_s4] ss:$0 sm:$0xff] }
  0x15   :  { %p31_p5 = scmp.gt.s32.totalorder %s257_s29, 2  ;;  %286 = vmatpush3.msra.mxu0 %v79_v3  ;;  %303 = vmatpush3.msra.mxu1 %v166_v20  ;;  %v265_v28 = vld [vmem:[%s462_s6] ss:$0 sm:$0xff] }
  0x16   :  { %p52_p6 = scmp.gt.s32.totalorder %s260_s9, 2  ;;  %287 = vmatprep.subr.mxu0 %v333_v1  ;;  %304 = vmatprep.subr.mxu1 %v333_v1 }
  0x17   :  { %s465_s29 = smov (!%p31_p5, %s257_s29), 2  ;;  %288 = vmatpush3.msra.mxu0 %v78_v4  ;;  %305 = vmatpush3.msra.mxu1 %v165_v21 }
  0x18   :  { %s467_s9 = smov (!%p52_p6, %s260_s9), 2  ;;  %289 = vmatprep.subr.mxu0 %v333_v1  ;;  %s258_s19 = sadd.s32 4294967294, %s465_s29  ;;  %306 = vmatprep.subr.mxu1 %v333_v1 }
  0x19   :  { %s259_s20 = sadd.s32 4294967295, %s465_s29  ;;  %290 = vmatpush3.msra.mxu0 %v77_v5  ;;  %s34_s23 = scalar_lea.vmem %s458_s2, %s258_s19  ;;  %307 = vmatpush3.msra.mxu1 %v164_v22 }
  0x1a   :  { %s37_s26 = scalar_lea.vmem %s458_s2, %s259_s20  ;;  %291 = vmatprep.subr.mxu0 %v333_v1  ;;  %v35_v8 = vld [vmem:[%s34_s23] sm:$0x1]  ;;  %s261_s30 = sadd.s32 4294967294, %s467_s9 }
  0x1b   :  { %v38_v9 = vld [vmem:[%s37_s26] sm:$0x1]  ;;  %s262_s8 = sadd.s32 4294967295, %s467_s9  ;;  %292 = vmatpush3.msra.mxu0 %v76_v6  ;;  %s335_s29 = smov 32  }
  0x1c   :  { %40 = vrot.lane.b32.xlu0 %v35_v8, %s335_s29  ;;  %46 = vrot.lane.b32.xlu1 %v38_v9, %s336_s0  ;;  %s55_s12 = scalar_lea.vmem %s458_s2, %s261_s30  ;;  %s58_s15 = scalar_lea.vmem %s458_s2, %s262_s8 }
  0x1d   :  { %v56_v10 = vld [vmem:[%s55_s12] sm:$0x1]  ;;  %293 = vmatprep.subr.mxu0 %v333_v1 }
  0x1e   :  { %v59_v11 = vld [vmem:[%s58_s15] sm:$0x1]  ;;  %294 = vmatpush3.msra.mxu0 %v75_v7 }
  0x1f   :  { %295 = vmatprep.subr.mxu0 %v333_v1 }
  0x20   :  { %61 = vrot.lane.b32.xlu0 %v56_v10, %s335_s29  ;;  %66 = vrot.lane.b32.xlu1 %v59_v11, %s336_s0 }
  0x21   :  { %296 = vmatpush3.msra.mxu0 %v74_v12 }
  0x8e   :  { %v41_v13 = vpop.permute.xlu0 %40  ;;  %v47_v14 = vpop.permute.xlu1 %46 }
  0x8f   :  { %44 = vst.msk [vmem:[#allocation2] sm:$0x1] %vm43_vm1, %v41_v13 }
  0x90   :  { %50 = vst.msk [vmem:[#allocation2] sm:$0x1] %vm49_vm2, %v47_v14 }
  0x92   :  { %v62_v15 = vpop.permute.xlu0 %61  ;;  %v67_v17 = vpop.permute.xlu1 %66 }
  0x93   :  { %64 = vst.msk [vmem:[#allocation2 + $0x1] sm:$0x1] %vm43_vm1, %v62_v15 }
  0x94   :  { %69 = vst.msk [vmem:[#allocation2 + $0x1] sm:$0x1] %vm49_vm2, %v67_v17 }
  0x95   :  { %72 = vst.msk [vmem:[#allocation2] sm:$0xff] %vm71_vm3, %v70_v16 }
  0x9c   :  { %v73_v18 = vld [vmem:[#allocation2] sm:$0xff] }
  0x9d   :  { %298 = vmatmul.mubr.msk.f32.vlgmr.msra.gmra.mxu0 %vm89_vm4, %v73_v18 }
 0x15d   :  { %v159_v24 = vpop.f32.mrf.mxu0 }
 0x15e   :  { %v160_v25 = vadd.f32 %v263_v23, %v159_v24 }
 0x15f   :  { %v299_v26 = vpop.f32.mrf.mxu0 }
 0x160   :  { %316 = vtanh.f32 %v160_v25 }
 0x16d   :  { %v317_v27 = vpop.eup %316 }
 0x16e   :  { %309 = vmatmul.mubr.msk.f32.vlgmr.msra.gmra.mxu1 %vm71_vm3, %v317_v27 }
 0x22e   :  { %v244_v29 = vpop.f32.mrf.mxu1 }
 0x22f   :  { %v245_v30 = vadd.f32 %v265_v28, %v244_v29 }
 0x230   :  { %v310_v31 = vpop.f32.mrf.mxu1 }
 0x231   :  { %248 = vst [vmem:[%s463_s7] sm:$0xff] %v245_v30 }

</bundles_post_ra>
